<compile_context>
chip_gen: v7x
topology: tpu7x:2x2x1
jax: 0.10.0
libtpu: 0.0.40
codegen_flags: <defaults>
</compile_context>

<pallas_src>
import functools

import jax
import jax.numpy as jnp
import numpy as np
from jax.experimental import pallas as pl
from jax.experimental.pallas import tpu as pltpu


def _vmem_limit_bytes():
    """Per-generation scoped-VMEM budget (~68% of physical, capped at 100 MiB)."""
    try:
        cap = int(pltpu.get_tpu_info().vmem_capacity_bytes)
    except Exception:                      # pragma: no cover - conservative fallback
        cap = 64 * 1024 * 1024
    return min(int(cap * 0.68), 100 * 1024 * 1024)


def _layer_norm(x, g, b, eps=1e-5):
    mu = jnp.mean(x, axis=-1, keepdims=True)
    var = jnp.mean((x - mu) ** 2, axis=-1, keepdims=True)
    return (x - mu) * jax.lax.rsqrt(var + eps) * g + b


def _seq_tile(length, cap):
    """Largest tile that divides `length` and is sublane aligned (x8) or full."""
    if length <= cap:
        return length
    for t in range(cap, 7, -1):
        if t % 8 == 0 and length % t == 0:
            return t
    return length


def _resident_spec():
    # Whole array held once in VMEM for the kernel's lifetime: single buffer,
    # single HBM->VMEM copy (constant operands never need double-buffering).
    return pl.BlockSpec(memory_space=pltpu.MemorySpace.VMEM)


# ---------------------------------------------------------------------------
# Stage 1: pre-norm + fused QKV projection (one batch element, one token tile)
# Outputs are lane-dense (tl, D) stores in the compute dtype; no head split.
# ---------------------------------------------------------------------------
def _qkv_kernel(x_ref, pre_g_ref, pre_b_ref,
                wq_ref, wk_ref, wv_ref, bq_ref, bk_ref, bv_ref,
                xn_ref, q_ref, k_ref, v_ref, *, scale):
    xn = _layer_norm(x_ref[...], pre_g_ref[...], pre_b_ref[...])       # (tl, D) f32
    xn_ref[0] = xn.astype(xn_ref.dtype)                                # residual source

    xc = xn.astype(wq_ref.dtype)     # bf16 (or f32) matmul operands, f32 accumulation
    q = jnp.dot(xc, wq_ref[...], preferred_element_type=jnp.float32) + bq_ref[...]
    q_ref[0] = (q * scale).astype(q_ref.dtype)      # fold 1/sqrt(hd) into q
    k = jnp.dot(xc, wk_ref[...], preferred_element_type=jnp.float32) + bk_ref[...]
    k_ref[0] = k.astype(k_ref.dtype)
    v = jnp.dot(xc, wv_ref[...], preferred_element_type=jnp.float32) + bv_ref[...]
    v_ref[0] = v.astype(v_ref.dtype)


# ---------------------------------------------------------------------------
# Stage 2a: single-pass multi-head attention (whole K/V row resident per batch)
# Per-head static lane slices; exp dominates (EUP), matmul shape is secondary.
# ---------------------------------------------------------------------------
def _attn_single_pass_kernel(q_ref, k_ref, v_ref, o_ref, *, num_heads, approx_recip):
    d = q_ref.shape[-1]
    hd = d // num_heads
    for h in range(num_heads):
        sl = slice(h * hd, (h + 1) * hd)
        qh = q_ref[0, :, sl]          # (tq, hd), scale already folded in
        kh = k_ref[0, :, sl]          # (L, hd)
        vh = v_ref[0, :, sl]          # (L, hd)
        s = jax.lax.dot_general(qh, kh, (((1,), (1,)), ((), ())),
                                preferred_element_type=jnp.float32)    # (tq, L)
        m = jnp.max(s, axis=-1, keepdims=True)
        p = jnp.exp(s - m)
        l = jnp.sum(p, axis=-1, keepdims=True)
        o = jnp.dot(p.astype(vh.dtype), vh, preferred_element_type=jnp.float32)
        o_ref[0, :, sl] = (o * pl.reciprocal(l, approx=approx_recip)).astype(o_ref.dtype)


# ---------------------------------------------------------------------------
# Stage 2b: flash (online-softmax) fallback when K/V for one batch exceed VMEM
# ---------------------------------------------------------------------------
def _attn_flash_kernel(q_ref, k_ref, v_ref, o_ref, m_sc, l_sc, acc_sc,
                       *, num_heads, approx_recip):
    ki = pl.program_id(2)
    d = q_ref.shape[-1]
    hd = d // num_heads

    @pl.when(ki == 0)
    def _init():
        m_sc[...] = jnp.full(m_sc.shape, -jnp.inf, jnp.float32)
        l_sc[...] = jnp.zeros(l_sc.shape, jnp.float32)
        acc_sc[...] = jnp.zeros(acc_sc.shape, jnp.float32)

    for h in range(num_heads):
        sl = slice(h * hd, (h + 1) * hd)
        qh = q_ref[0, :, sl]
        kh = k_ref[0, :, sl]
        vh = v_ref[0, :, sl]
        s = jax.lax.dot_general(qh, kh, (((1,), (1,)), ((), ())),
                                preferred_element_type=jnp.float32)    # (tq, tkv)
        m_prev = m_sc[h]                                               # (tq, 1)
        m_new = jnp.maximum(m_prev, jnp.max(s, axis=-1, keepdims=True))
        alpha = jnp.exp(m_prev - m_new)
        p = jnp.exp(s - m_new)
        l_sc[h] = alpha * l_sc[h] + jnp.sum(p, axis=-1, keepdims=True)
        acc_sc[:, sl] = alpha * acc_sc[:, sl] + jnp.dot(
            p.astype(vh.dtype), vh, preferred_element_type=jnp.float32)
        m_sc[h] = m_new

    @pl.when(ki == pl.num_programs(2) - 1)
    def _finalize():
        for h in range(num_heads):
            sl = slice(h * hd, (h + 1) * hd)
            o_ref[0, :, sl] = (acc_sc[:, sl] *
                               pl.reciprocal(l_sc[h], approx=approx_recip)
                               ).astype(o_ref.dtype)


# ---------------------------------------------------------------------------
# Stage 3: out-proj + residual + norm1 + fused FFN + residual + norm2
# ---------------------------------------------------------------------------
def _out_ffn_kernel(xn_ref, attn_ref, wo_ref, bo_ref,
                    n1_g_ref, n1_b_ref, w1_ref, b1_ref,
                    w2_ref, b2_ref, n2_g_ref, n2_b_ref, o_ref):
    cd = wo_ref.dtype
    xn = xn_ref[0].astype(jnp.float32)                # (tl, D) residual source
    a = attn_ref[0].astype(cd)                        # (tl, D)

    ao = jnp.dot(a, wo_ref[...], preferred_element_type=jnp.float32) + bo_ref[...]
    y = _layer_norm(xn + ao, n1_g_ref[...], n1_b_ref[...])

    h = jnp.dot(y.astype(cd), w1_ref[...], preferred_element_type=jnp.float32) + b1_ref[...]
    h = jax.nn.gelu(h, approximate=False)             # exact erf GELU (nn.GELU default)
    f = jnp.dot(h.astype(cd), w2_ref[...], preferred_element_type=jnp.float32) + b2_ref[...]

    o_ref[...] = _layer_norm(y + f, n2_g_ref[...], n2_b_ref[...]).astype(o_ref.dtype)


# ---------------------------------------------------------------------------
# Wrapper
# ---------------------------------------------------------------------------
def mvt_encoder(x_lnd, params, num_heads, compute_dtype=jnp.bfloat16,
                token_tile=None, q_tile=None, kv_tile=None):
    """x_lnd: (L, N, D) float32, PyTorch nn.MultiheadAttention seq-first layout."""
    L, N, D = x_lnd.shape
    assert D % num_heads == 0
    assert D % 128 == 0, "model dim must be a multiple of 128 (pad D in the caller)"
    cd = jnp.dtype(compute_dtype)
    f32 = jnp.float32
    scale = 1.0 / float(np.sqrt(D // num_heads))
    approx_recip = (cd != jnp.dtype(jnp.float32))

    vmem_limit = _vmem_limit_bytes()

    def cparams(sem):
        return pltpu.CompilerParams(dimension_semantics=sem,
                                    vmem_limit_bytes=vmem_limit)

    tl = token_tile if token_tile is not None else _seq_tile(L, 512)
    tq = q_tile if q_tile is not None else _seq_tile(L, 256)
    if kv_tile is not None:
        tkv = kv_tile
    else:
        # Single-pass softmax whenever one batch's whole K+V fits comfortably.
        kv_bytes = 2 * L * D * cd.itemsize
        tkv = L if kv_bytes <= int(0.4 * vmem_limit) else _seq_tile(L, 512)
    for t in (tl, tq, tkv):
        assert L % t == 0 and (t % 8 == 0 or t == L), f"bad sequence tile {t} for L={L}"

    # Resident weights in the matmul compute dtype (bf16 halves VMEM/DMA bytes).
    wq, wk, wv = (params[kk].astype(cd) for kk in ('wq', 'wk', 'wv'))
    wo, w1, w2 = (params[kk].astype(cd) for kk in ('wo', 'w1', 'w2'))

    # Free, contiguous reshape: lets BlockSpec index_maps pick a single batch
    # element as a 128-aligned lane block (no HBM transposes anywhere).
    x2 = x_lnd.reshape(L, N * D)

    # ---- stage 1: pre-norm + fused QKV projection ---------------------------
    xn, q, k, v = pl.pallas_call(
        functools.partial(_qkv_kernel, scale=scale),
        grid=(N, L // tl),
        in_specs=[
            pl.BlockSpec((tl, D), lambda n, i: (i, n)),        # rows of batch n
            _resident_spec(), _resident_spec(),                # pre-norm gamma/beta
            _resident_spec(), _resident_spec(), _resident_spec(),   # wq, wk, wv
            _resident_spec(), _resident_spec(), _resident_spec(),   # bq, bk, bv
        ],
        out_specs=(
            pl.BlockSpec((1, tl, D), lambda n, i: (n, i, 0)),
            pl.BlockSpec((1, tl, D), lambda n, i: (n, i, 0)),
            pl.BlockSpec((1, tl, D), lambda n, i: (n, i, 0)),
            pl.BlockSpec((1, tl, D), lambda n, i: (n, i, 0)),
        ),
        out_shape=(
            jax.ShapeDtypeStruct((N, L, D), cd),   # xn (residual source)
            jax.ShapeDtypeStruct((N, L, D), cd),   # q (pre-scaled)
            jax.ShapeDtypeStruct((N, L, D), cd),   # k
            jax.ShapeDtypeStruct((N, L, D), cd),   # v
        ),
        compiler_params=cparams(("parallel", "parallel")),
    )(x2, params['pre_g'], params['pre_b'], wq, wk, wv,
      params['bq'], params['bk'], params['bv'])

    # ---- stage 2: multi-head attention --------------------------------------
    if tkv == L:
        # K/V index_map is constant across the q-tile axis -> DMAed once per batch.
        attn = pl.pallas_call(
            functools.partial(_attn_single_pass_kernel,
                              num_heads=num_heads, approx_recip=approx_recip),
            grid=(N, L // tq),
            in_specs=[
                pl.BlockSpec((1, tq, D), lambda n, qi: (n, qi, 0)),
                pl.BlockSpec((1, L, D), lambda n, qi: (n, 0, 0)),
                pl.BlockSpec((1, L, D), lambda n, qi: (n, 0, 0)),
            ],
            out_specs=pl.BlockSpec((1, tq, D), lambda n, qi: (n, qi, 0)),
            out_shape=jax.ShapeDtypeStruct((N, L, D), cd),
            compiler_params=cparams(("parallel", "parallel")),
        )(q, k, v)
    else:
        attn = pl.pallas_call(
            functools.partial(_attn_flash_kernel,
                              num_heads=num_heads, approx_recip=approx_recip),
            grid=(N, L // tq, L // tkv),
            in_specs=[
                pl.BlockSpec((1, tq, D), lambda n, qi, ki: (n, qi, 0)),
                pl.BlockSpec((1, tkv, D), lambda n, qi, ki: (n, ki, 0)),
                pl.BlockSpec((1, tkv, D), lambda n, qi, ki: (n, ki, 0)),
            ],
            out_specs=pl.BlockSpec((1, tq, D), lambda n, qi, ki: (n, qi, 0)),
            out_shape=jax.ShapeDtypeStruct((N, L, D), cd),
            scratch_shapes=[
                pltpu.VMEM((num_heads, tq, 1), f32),   # running max
                pltpu.VMEM((num_heads, tq, 1), f32),   # running sum
                pltpu.VMEM((tq, D), f32),              # output accumulator
            ],
            compiler_params=cparams(("parallel", "parallel", "arbitrary")),
        )(q, k, v)

    # ---- stage 3: out-proj + norm1 + FFN + norm2 -----------------------------
    out = pl.pallas_call(
        _out_ffn_kernel,
        grid=(N, L // tl),
        in_specs=[
            pl.BlockSpec((1, tl, D), lambda n, i: (n, i, 0)),   # xn (residual)
            pl.BlockSpec((1, tl, D), lambda n, i: (n, i, 0)),   # attention output
            _resident_spec(), _resident_spec(),                 # wo, bo
            _resident_spec(), _resident_spec(),                 # norm1 gamma/beta
            _resident_spec(), _resident_spec(),                 # w1, b1
            _resident_spec(), _resident_spec(),                 # w2, b2
            _resident_spec(), _resident_spec(),                 # norm2 gamma/beta
        ],
        out_specs=pl.BlockSpec((tl, D), lambda n, i: (i, n)),   # back into (L, N*D)
        out_shape=jax.ShapeDtypeStruct((L, N * D), f32),
        compiler_params=cparams(("parallel", "parallel")),
    )(xn, attn, wo, params['bo'], params['n1_g'], params['n1_b'],
      w1, params['b1'], w2, params['b2'], params['n2_g'], params['n2_b'])

    return out.reshape(L, N, D)


# ---------------------------------------------------------------------------
# Parameter init + pure-JAX reference
# ---------------------------------------------------------------------------
def init_params(key, dim):
    ks = jax.random.split(key, 16)
    nrm = lambda k, shape: (0.05 * jax.random.normal(k, shape)).astype(jnp.float32)
    return {
        'pre_g': 1.0 + nrm(ks[0], (1, dim)), 'pre_b': nrm(ks[1], (1, dim)),
        'n1_g': 1.0 + nrm(ks[2], (1, dim)),  'n1_b': nrm(ks[3], (1, dim)),
        'n2_g': 1.0 + nrm(ks[4], (1, dim)),  'n2_b': nrm(ks[5], (1, dim)),
        # attention projections stored pre-transposed (applied as x @ W)
        'wq': nrm(ks[6], (dim, dim)), 'wk': nrm(ks[7], (dim, dim)),
        'wv': nrm(ks[8], (dim, dim)),
        'bq': nrm(ks[9], (1, dim)), 'bk': nrm(ks[10], (1, dim)),
        'bv': nrm(ks[11], (1, dim)),
        'wo': nrm(ks[12], (dim, dim)), 'bo': nrm(ks[13], (1, dim)),
        'w1': nrm(ks[14], (dim, 2 * dim)), 'b1': jnp.zeros((1, 2 * dim), jnp.float32),
        'w2': nrm(ks[15], (2 * dim, dim)), 'b2': jnp.zeros((1, dim), jnp.float32),
    }


def mvt_encoder_ref(x_lnd, p, num_heads):
    x = jnp.transpose(x_lnd, (1, 0, 2))
    B, L, D = x.shape
    hd = D // num_heads
    xn = _layer_norm(x, p['pre_g'], p['pre_b'])
    q = xn @ p['wq'] + p['bq']
    k = xn @ p['wk'] + p['bk']
    v = xn @ p['wv'] + p['bv']
    qh = q.reshape(B, L, num_heads, hd).transpose(0, 2, 1, 3)
    kh = k.reshape(B, L, num_heads, hd).transpose(0, 2, 1, 3)
    vh = v.reshape(B, L, num_heads, hd).transpose(0, 2, 1, 3)
    s = jnp.einsum('bhld,bhkd->bhlk', qh, kh) / jnp.sqrt(jnp.float32(hd))
    patt = jax.nn.softmax(s, axis=-1)
    a = jnp.einsum('bhlk,bhkd->bhld', patt, vh).transpose(0, 2, 1, 3).reshape(B, L, D)
    a = a @ p['wo'] + p['bo']
    y = _layer_norm(xn + a, p['n1_g'], p['n1_b'])
    f = jax.nn.gelu(y @ p['w1'] + p['b1'], approximate=False) @ p['w2'] + p['b2']
    out = _layer_norm(y + f, p['n2_g'], p['n2_b'])
    return jnp.transpose(out, (1, 0, 2))


if __name__ == "__main__":
    # seq=16, batch=2, dim=128 (lane aligned), heads=4 (module default 16 is configurable)
    L, N, D, H = 16, 2, 128, 4
    key = jax.random.PRNGKey(0)
    kx, kp = jax.random.split(key)
    x = jax.random.normal(kx, (L, N, D), dtype=jnp.float32)
    params = init_params(kp, D)

    ref = mvt_encoder_ref(x, params, num_heads=H)

    # Exact f32, default single-pass attention (whole K/V resident per batch).
    out_sp = jax.block_until_ready(
        mvt_encoder(x, params, H, compute_dtype=jnp.float32))
    np.testing.assert_allclose(np.asarray(out_sp), np.asarray(ref),
                               rtol=2e-4, atol=2e-4)

    # Exact f32, forced flash/online-softmax fallback (small q/kv tiles).
    out_fl = jax.block_until_ready(
        mvt_encoder(x, params, H, compute_dtype=jnp.float32, q_tile=8, kv_tile=8))
    np.testing.assert_allclose(np.asarray(out_fl), np.asarray(ref),
                               rtol=2e-4, atol=2e-4)

    # bf16 matmul operands + bf16 intermediates, f32 accumulation; loose tolerance.
    out_bf16 = jax.block_until_ready(
        mvt_encoder(x, params, H, compute_dtype=jnp.bfloat16))
    np.testing.assert_allclose(np.asarray(out_bf16), np.asarray(ref),
                               rtol=5e-2, atol=5e-2)

    print("KERNEL_OK")
</pallas_src>

<mosaic_0001>
module attributes {stable_mosaic.version = 11 : i64} {
  func.func @_qkv_kernel(%arg0: i32, %arg1: i32, %arg2: memref<16x128xf32, #tpu.memory_space<vmem>>, %arg3: memref<1x128xf32, #tpu.memory_space<vmem>>, %arg4: memref<1x128xf32, #tpu.memory_space<vmem>>, %arg5: memref<128x128xf32, #tpu.memory_space<vmem>>, %arg6: memref<128x128xf32, #tpu.memory_space<vmem>>, %arg7: memref<128x128xf32, #tpu.memory_space<vmem>>, %arg8: memref<1x128xf32, #tpu.memory_space<vmem>>, %arg9: memref<1x128xf32, #tpu.memory_space<vmem>>, %arg10: memref<1x128xf32, #tpu.memory_space<vmem>>, %arg11: memref<1x16x128xf32, #tpu.memory_space<vmem>>, %arg12: memref<1x16x128xf32, #tpu.memory_space<vmem>>, %arg13: memref<1x16x128xf32, #tpu.memory_space<vmem>>, %arg14: memref<1x16x128xf32, #tpu.memory_space<vmem>>) attributes {dimension_semantics = [#tpu.dimension_semantics<parallel>, #tpu.dimension_semantics<parallel>], iteration_bounds = array<i64: 2, 1>, scalar_prefetch = 0 : i64, scratch_operands = 0 : i64, tpu.core_type = #tpu.core_type<tc>, window_params = [{transform_indices = @transform_0, window_bounds = array<i64: 16, 128>}, {pipeline_mode = #tpu.pipeline_mode<synchronous>, transform_indices = @transform_1, window_bounds = array<i64: 1, 128>}, {pipeline_mode = #tpu.pipeline_mode<synchronous>, transform_indices = @transform_2, window_bounds = array<i64: 1, 128>}, {pipeline_mode = #tpu.pipeline_mode<synchronous>, transform_indices = @transform_3, window_bounds = array<i64: 128, 128>}, {pipeline_mode = #tpu.pipeline_mode<synchronous>, transform_indices = @transform_4, window_bounds = array<i64: 128, 128>}, {pipeline_mode = #tpu.pipeline_mode<synchronous>, transform_indices = @transform_5, window_bounds = array<i64: 128, 128>}, {pipeline_mode = #tpu.pipeline_mode<synchronous>, transform_indices = @transform_6, window_bounds = array<i64: 1, 128>}, {pipeline_mode = #tpu.pipeline_mode<synchronous>, transform_indices = @transform_7, window_bounds = array<i64: 1, 128>}, {pipeline_mode = #tpu.pipeline_mode<synchronous>, transform_indices = @transform_8, window_bounds = array<i64: 1, 128>}, {transform_indices = @transform_9, window_bounds = array<i64: 1, 16, 128>}, {transform_indices = @transform_10, window_bounds = array<i64: 1, 16, 128>}, {transform_indices = @transform_11, window_bounds = array<i64: 1, 16, 128>}, {transform_indices = @transform_12, window_bounds = array<i64: 1, 16, 128>}]} {
    %c0 = arith.constant 0 : index
    %c0_0 = arith.constant 0 : index
    %0 = vector.load %arg2[%c0, %c0_0] : memref<16x128xf32, #tpu.memory_space<vmem>>, vector<16x128xf32>
    %c0_1 = arith.constant 0 : index
    %c0_2 = arith.constant 0 : index
    %1 = vector.load %arg3[%c0_1, %c0_2] : memref<1x128xf32, #tpu.memory_space<vmem>>, vector<1x128xf32>
    %c0_3 = arith.constant 0 : index
    %c0_4 = arith.constant 0 : index
    %2 = vector.load %arg4[%c0_3, %c0_4] : memref<1x128xf32, #tpu.memory_space<vmem>>, vector<1x128xf32>
    %cst = arith.constant dense<0.000000e+00> : vector<16xf32>
    %3 = vector.multi_reduction <add>, %0, %cst [1] : vector<16x128xf32> to vector<16xf32>
    %4 = vector.shape_cast %3 : vector<16xf32> to vector<16x1xf32>
    %cst_5 = arith.constant 1.280000e+02 : f32
    %5 = vector.broadcast %cst_5 : f32 to vector<16x1xf32>
    %6 = arith.divf %4, %5 : vector<16x1xf32>
    %7 = vector.broadcast %6 : vector<16x1xf32> to vector<16x128xf32>
    %8 = arith.subf %0, %7 : vector<16x128xf32>
    %9 = arith.mulf %8, %8 : vector<16x128xf32>
    %cst_6 = arith.constant dense<0.000000e+00> : vector<16xf32>
    %10 = vector.multi_reduction <add>, %9, %cst_6 [1] : vector<16x128xf32> to vector<16xf32>
    %11 = vector.shape_cast %10 : vector<16xf32> to vector<16x1xf32>
    %cst_7 = arith.constant 1.280000e+02 : f32
    %12 = vector.broadcast %cst_7 : f32 to vector<16x1xf32>
    %13 = arith.divf %11, %12 : vector<16x1xf32>
    %14 = vector.broadcast %6 : vector<16x1xf32> to vector<16x128xf32>
    %15 = arith.subf %0, %14 : vector<16x128xf32>
    %cst_8 = arith.constant 9.99999974E-6 : f32
    %16 = vector.broadcast %cst_8 : f32 to vector<16x1xf32>
    %17 = arith.addf %13, %16 : vector<16x1xf32>
    %18 = math.rsqrt %17 : vector<16x1xf32>
    %19 = vector.broadcast %18 : vector<16x1xf32> to vector<16x128xf32>
    %20 = arith.mulf %15, %19 : vector<16x128xf32>
    %21 = vector.broadcast %1 : vector<1x128xf32> to vector<16x128xf32>
    %22 = arith.mulf %20, %21 : vector<16x128xf32>
    %23 = vector.broadcast %2 : vector<1x128xf32> to vector<16x128xf32>
    %24 = arith.addf %22, %23 : vector<16x128xf32>
    %c0_9 = arith.constant 0 : index
    %c0_10 = arith.constant 0 : index
    %c0_11 = arith.constant 0 : index
    %25 = vector.load %arg11[%c0_9, %c0_10, %c0_11] : memref<1x16x128xf32, #tpu.memory_space<vmem>>, vector<1x16x128xf32>
    %26 = vector.shape_cast %25 : vector<1x16x128xf32> to vector<16x128xf32>
    %27 = vector.shape_cast %24 : vector<16x128xf32> to vector<1x16x128xf32>
    tpu.vector_store %arg11[%c0_9, %c0_10, %c0_11], %27 {strides = array<i32>} : memref<1x16x128xf32, #tpu.memory_space<vmem>>, vector<1x16x128xf32>,
    %c0_12 = arith.constant 0 : index
    %c0_13 = arith.constant 0 : index
    %28 = vector.load %arg5[%c0_12, %c0_13] : memref<128x128xf32, #tpu.memory_space<vmem>>, vector<128x128xf32>
    %cst_14 = arith.constant dense<0.000000e+00> : vector<16x128xf32>
    %29 = tpu.matmul %24, %28, %cst_14 {dimension_numbers = #tpu.dot_dimension_numbers<[1], [0], [0], [1], [0, 0, 1, 1], [], []>} : vector<16x128xf32>, vector<128x128xf32>, vector<16x128xf32> -> vector<16x128xf32>
    %c0_15 = arith.constant 0 : index
    %c0_16 = arith.constant 0 : index
    %30 = vector.load %arg8[%c0_15, %c0_16] : memref<1x128xf32, #tpu.memory_space<vmem>>, vector<1x128xf32>
    %31 = vector.broadcast %30 : vector<1x128xf32> to vector<16x128xf32>
    %32 = arith.addf %29, %31 : vector<16x128xf32>
    %cst_17 = arith.constant 0.176776692 : f32
    %33 = vector.broadcast %cst_17 : f32 to vector<16x128xf32>
    %34 = arith.mulf %32, %33 : vector<16x128xf32>
    %c0_18 = arith.constant 0 : index
    %c0_19 = arith.constant 0 : index
    %c0_20 = arith.constant 0 : index
    %35 = vector.load %arg12[%c0_18, %c0_19, %c0_20] : memref<1x16x128xf32, #tpu.memory_space<vmem>>, vector<1x16x128xf32>
    %36 = vector.shape_cast %35 : vector<1x16x128xf32> to vector<16x128xf32>
    %37 = vector.shape_cast %34 : vector<16x128xf32> to vector<1x16x128xf32>
    tpu.vector_store %arg12[%c0_18, %c0_19, %c0_20], %37 {strides = array<i32>} : memref<1x16x128xf32, #tpu.memory_space<vmem>>, vector<1x16x128xf32>,
    %c0_21 = arith.constant 0 : index
    %c0_22 = arith.constant 0 : index
    %38 = vector.load %arg6[%c0_21, %c0_22] : memref<128x128xf32, #tpu.memory_space<vmem>>, vector<128x128xf32>
    %cst_23 = arith.constant dense<0.000000e+00> : vector<16x128xf32>
    %39 = tpu.matmul %24, %38, %cst_23 {dimension_numbers = #tpu.dot_dimension_numbers<[1], [0], [0], [1], [0, 0, 1, 1], [], []>} : vector<16x128xf32>, vector<128x128xf32>, vector<16x128xf32> -> vector<16x128xf32>
    %c0_24 = arith.constant 0 : index
    %c0_25 = arith.constant 0 : index
    %40 = vector.load %arg9[%c0_24, %c0_25] : memref<1x128xf32, #tpu.memory_space<vmem>>, vector<1x128xf32>
    %41 = vector.broadcast %40 : vector<1x128xf32> to vector<16x128xf32>
    %42 = arith.addf %39, %41 : vector<16x128xf32>
    %c0_26 = arith.constant 0 : index
    %c0_27 = arith.constant 0 : index
    %c0_28 = arith.constant 0 : index
    %43 = vector.load %arg13[%c0_26, %c0_27, %c0_28] : memref<1x16x128xf32, #tpu.memory_space<vmem>>, vector<1x16x128xf32>
    %44 = vector.shape_cast %43 : vector<1x16x128xf32> to vector<16x128xf32>
    %45 = vector.shape_cast %42 : vector<16x128xf32> to vector<1x16x128xf32>
    tpu.vector_store %arg13[%c0_26, %c0_27, %c0_28], %45 {strides = array<i32>} : memref<1x16x128xf32, #tpu.memory_space<vmem>>, vector<1x16x128xf32>,
    %c0_29 = arith.constant 0 : index
    %c0_30 = arith.constant 0 : index
    %46 = vector.load %arg7[%c0_29, %c0_30] : memref<128x128xf32, #tpu.memory_space<vmem>>, vector<128x128xf32>
    %cst_31 = arith.constant dense<0.000000e+00> : vector<16x128xf32>
    %47 = tpu.matmul %24, %46, %cst_31 {dimension_numbers = #tpu.dot_dimension_numbers<[1], [0], [0], [1], [0, 0, 1, 1], [], []>} : vector<16x128xf32>, vector<128x128xf32>, vector<16x128xf32> -> vector<16x128xf32>
    %c0_32 = arith.constant 0 : index
    %c0_33 = arith.constant 0 : index
    %48 = vector.load %arg10[%c0_32, %c0_33] : memref<1x128xf32, #tpu.memory_space<vmem>>, vector<1x128xf32>
    %49 = vector.broadcast %48 : vector<1x128xf32> to vector<16x128xf32>
    %50 = arith.addf %47, %49 : vector<16x128xf32>
    %c0_34 = arith.constant 0 : index
    %c0_35 = arith.constant 0 : index
    %c0_36 = arith.constant 0 : index
    %51 = vector.load %arg14[%c0_34, %c0_35, %c0_36] : memref<1x16x128xf32, #tpu.memory_space<vmem>>, vector<1x16x128xf32>
    %52 = vector.shape_cast %51 : vector<1x16x128xf32> to vector<16x128xf32>
    %53 = vector.shape_cast %50 : vector<16x128xf32> to vector<1x16x128xf32>
    tpu.vector_store %arg14[%c0_34, %c0_35, %c0_36], %53 {strides = array<i32>} : memref<1x16x128xf32, #tpu.memory_space<vmem>>, vector<1x16x128xf32>,
    return
  }
  func.func @transform_0(%arg0: i32, %arg1: i32) -> (i32, i32) {
    %c0_i32 = arith.constant 0 : i32
    return %arg1, %arg0 : i32, i32
  }
  func.func @transform_1(%arg0: i32, %arg1: i32) -> (i32, i32) {
    %c0_i32 = arith.constant 0 : i32
    %c0_i32_0 = arith.constant 0 : i32
    %c0_i32_1 = arith.constant 0 : i32
    return %c0_i32, %c0_i32_0 : i32, i32
  }
  func.func @transform_2(%arg0: i32, %arg1: i32) -> (i32, i32) {
    %c0_i32 = arith.constant 0 : i32
    %c0_i32_0 = arith.constant 0 : i32
    %c0_i32_1 = arith.constant 0 : i32
    return %c0_i32, %c0_i32_0 : i32, i32
  }
  func.func @transform_3(%arg0: i32, %arg1: i32) -> (i32, i32) {
    %c0_i32 = arith.constant 0 : i32
    %c0_i32_0 = arith.constant 0 : i32
    %c0_i32_1 = arith.constant 0 : i32
    return %c0_i32, %c0_i32_0 : i32, i32
  }
  func.func @transform_4(%arg0: i32, %arg1: i32) -> (i32, i32) {
    %c0_i32 = arith.constant 0 : i32
    %c0_i32_0 = arith.constant 0 : i32
    %c0_i32_1 = arith.constant 0 : i32
    return %c0_i32, %c0_i32_0 : i32, i32
  }
  func.func @transform_5(%arg0: i32, %arg1: i32) -> (i32, i32) {
    %c0_i32 = arith.constant 0 : i32
    %c0_i32_0 = arith.constant 0 : i32
    %c0_i32_1 = arith.constant 0 : i32
    return %c0_i32, %c0_i32_0 : i32, i32
  }
  func.func @transform_6(%arg0: i32, %arg1: i32) -> (i32, i32) {
    %c0_i32 = arith.constant 0 : i32
    %c0_i32_0 = arith.constant 0 : i32
    %c0_i32_1 = arith.constant 0 : i32
    return %c0_i32, %c0_i32_0 : i32, i32
  }
  func.func @transform_7(%arg0: i32, %arg1: i32) -> (i32, i32) {
    %c0_i32 = arith.constant 0 : i32
    %c0_i32_0 = arith.constant 0 : i32
    %c0_i32_1 = arith.constant 0 : i32
    return %c0_i32, %c0_i32_0 : i32, i32
  }
  func.func @transform_8(%arg0: i32, %arg1: i32) -> (i32, i32) {
    %c0_i32 = arith.constant 0 : i32
    %c0_i32_0 = arith.constant 0 : i32
    %c0_i32_1 = arith.constant 0 : i32
    return %c0_i32, %c0_i32_0 : i32, i32
  }
  func.func @transform_9(%arg0: i32, %arg1: i32) -> (i32, i32, i32) {
    %c0_i32 = arith.constant 0 : i32
    %c0_i32_0 = arith.constant 0 : i32
    return %arg0, %arg1, %c0_i32 : i32, i32, i32
  }
  func.func @transform_10(%arg0: i32, %arg1: i32) -> (i32, i32, i32) {
    %c0_i32 = arith.constant 0 : i32
    %c0_i32_0 = arith.constant 0 : i32
    return %arg0, %arg1, %c0_i32 : i32, i32, i32
  }
  func.func @transform_11(%arg0: i32, %arg1: i32) -> (i32, i32, i32) {
    %c0_i32 = arith.constant 0 : i32
    %c0_i32_0 = arith.constant 0 : i32
    return %arg0, %arg1, %c0_i32 : i32, i32, i32
  }
  func.func @transform_12(%arg0: i32, %arg1: i32) -> (i32, i32, i32) {
    %c0_i32 = arith.constant 0 : i32
    %c0_i32_0 = arith.constant 0 : i32
    return %arg0, %arg1, %c0_i32 : i32, i32, i32
  }
}

</mosaic_0001>

<bundles_post_ra>
// kernel: tpu_custom_call.1
= control target key start
LH: loop header
LB: loop body
LE: loop exit
PB: predicated region body
PF: predicated region fallthrough
CT: control target
= control target key end

     0   :  { %s2408_s0 = inlined_call_operand.hbm [shape: f32[16,256], index: 0, kind: input, shape index: {}]   ;;  %s2409_s1 = inlined_call_operand.vmem [shape: f32[1,128], index: 1, kind: input, shape index: {}]   ;;  %s2410_s2 = inlined_call_operand.vmem [shape: f32[1,128], index: 2, kind: input, shape index: {}]   ;;  %s2411_s3 = inlined_call_operand.hbm [shape: f32[128,128], index: 3, kind: input, shape index: {}]   ;;  %s2412_s4 = inlined_call_operand.hbm [shape: f32[128,128], index: 4, kind: input, shape index: {}]   ;;  %s2413_s5 = inlined_call_operand.hbm [shape: f32[128,128], index: 5, kind: input, shape index: {}]   ;;  %s2414_s6 = inlined_call_operand.vmem [shape: f32[1,128], index: 6, kind: input, shape index: {}]   ;;  %s2415_s7 = inlined_call_operand.vmem [shape: f32[1,128], index: 7, kind: input, shape index: {}]   ;;  %s2416_s8 = inlined_call_operand.vmem [shape: f32[1,128], index: 8, kind: input, shape index: {}]   ;;  %s2417_s9 = inlined_call_operand.hbm [shape: f32[2,16,128], index: 9, kind: output, shape index: {0}]   ;;  %s2418_s10 = inlined_call_operand.hbm [shape: f32[2,16,128], index: 10, kind: output, shape index: {1}]   ;;  %s2419_s11 = inlined_call_operand.hbm [shape: f32[2,16,128], index: 11, kind: output, shape index: {2}]   ;;  %s2420_s12 = inlined_call_operand.hbm [shape: f32[2,16,128], index: 12, kind: output, shape index: {3}]  }
   0x1   :  { %2438 = sst [smem:[#allocation25_spill]] %s2411_s3 }
   0x2   :  { %2439 = sst [smem:[#allocation26_spill]] %s2414_s6 }
   0x3   :  { %2440 = sst [smem:[#allocation27_spill]] %s2415_s7 }
   0x4   :  { %2441 = sst [smem:[#allocation28_spill]] %s2416_s8 }
   0x5   :  { %2442 = sst [smem:[#allocation29_spill]] %s2418_s10 }
   0x6   :  { %2443 = sst [smem:[#allocation30_spill]] %s2419_s11 }
   0x7   :  { %2444 = sst [smem:[#allocation31_spill]] %s2420_s12 }
   0x8   :  { %18 = vsyncpa [#allocation3], 0 }
   0x9   :  { %20 = vsyncpa [#allocation3 + $0x1], 0 }
   0xa   :  { %21 = vsyncpa [#allocation6], 0 }
   0xb   :  { %22 = vsyncpa [#allocation9], 0 }
   0xc   :  { %23 = vsyncpa [#allocation4], 0 }
   0xd   :  { %25 = vsyncpa [#allocation4 + $0x1], 0 }
   0xe   :  { %26 = vsyncpa [#allocation12], 0 }
   0xf   :  { %28 = vsyncpa [#allocation12 + $0x1], 0 }
  0x10   :  { %29 = vsyncpa [#allocation15], 0 }
  0x11   :  { %31 = vsyncpa [#allocation15 + $0x1], 0  ;;  %s1971_s21 = smov 0   ;;  %s1973_s22 = smov 0  }
  0x12   :  { %s1975_s23 = smov 0   ;;  %s1977_s24 = smov 0  }
  0x13   :  { %s1979_s25 = smov 0   ;;  %s1981_s26 = smov 0  }
  0x14 LB: > { %2445 = sst [smem:[#allocation22_spill]] %s1871_s21  ;;  %s2002_s27 = sadd.s32 4294967295, %s1891_s26   ;;  %s1891_s26 = sphi %s1981_s26, %s37_s26   ;;  %s1887_s25 = sphi %s1979_s25, %s2484_s25   ;;  %s1883_s24 = sphi %s1977_s24, %s2483_s24   ;;  %s1879_s23 = sphi %s1975_s23, %s2482_s23   ;;  %s1875_s22 = sphi %s1973_s22, %s2481_s22   ;;  %s1871_s21 = sphi %s1971_s21, %s2480_s21  }
  0x15   : > { %2446 = sst [smem:[#allocation23_spill]] %s1891_s26  ;;  %s2421_s28 = sadd.s32 4294967294, %s1891_s26  }
  0x16   : > { %p65_p0 = scmp.ne.s32.totalorder %s1879_s23, %s1875_s22  ;;  %p66_p1 = scmp.eq.s32.totalorder %s1891_s26, 0 }
  0x17   : > { %p71_p2 = scmp.ne.s32.totalorder %s1875_s22, %s1871_s21  ;;  %p2427_p3 = scmp.eq.s32.totalorder %s2002_s27, 0 }
  0x18   : > { %p2011_p4 = por %p66_p1, %p65_p0  ;;  %p265_p5 = scmp.eq.s32.totalorder %s2002_s27, 1 }
  0x19   : > { %p2018_p6 = por %p2427_p3, %p71_p2  ;;  %p271_p7 = scmp.eq.s32.totalorder %s2421_s28, 1 }
  0x1a   : > { %p2024_p8 = por %p265_p5, %p65_p0  ;;  %p1184_p9 = scmp.ge.s32.totalorder %s1891_s26, 1 }
  0x1b   : > { %s2448_s30 = scalar_select %p2018_p6, 1, 0 }
  0x1c   : > { %s2449_s13 = scalar_select %p2024_p8, 1, 0 }
  0x1d   : > { %p2029_p10 = por %p271_p7, %p71_p2  ;;  %p362_p11 = scmp.lt.s32.totalorder %s1891_s26, 3 }
  0x1e   : > { %s1893_s16 = smov [#allocation5]   ;;  %p1530_p1 = scmp.lt.s32.totalorder %s1891_s26, 2 }
  0x1f   : > { %s2450_s14 = scalar_select %p2029_p10, 1, 0 }
  0x20   : > { %p2034_p12 = pnand %p1184_p9, %p362_p11  ;;  %s380_s17 = sshll.u32 %s1893_s16, 4  ;;  %s2038_s17 = int_to_ptr.vmem [resolvable:$true] %s380_s17 }
  0x21   : > { %2451 = sst [smem:[#allocation24_spill]] %s2450_s14  ;;  %p2052_p2 = pnand %p1530_p1, %p2011_p4 }
  0x22   : > { %s2452_s15 = scalar_select %p2034_p12, 1, 0 }
  0x23   : > { %p1500_p13 = pneg %p2034_p12  ;;  %s1894_s20 = smov [#allocation7]  }
  0x24   : > { %s2454_s19 = scalar_select %p2052_p2, 1, 0 }
  0x25   : > { %p2046_p5 = pnand %p1500_p13, %p2427_p3  ;;  %s393_s28 = sshll.u32 %s1894_s20, 4  ;;  %s2056_s28 = int_to_ptr.vmem [resolvable:$true] %s393_s28 }
  0x26   : > { %s2455_s3 = sld [smem:[#allocation25_spill]] }
  0x27   : > { %p2066_p9 = pneg %p2046_p5 }
  0x2c   : > { %s1595_s21 = scalar_lea.hbm %s2455_s3, 2048 }
  0x2d   : > { %p1596_p7 = scmp.ne.s32.totalorder %s2455_s3, %s1595_s21  ;;  %p1602_p13 = scmp.lt.u32.totalorder %s1595_s21, %s2455_s3 }
  0x2f   : > { %p1598_p4 = pnand %p2066_p9, %p1596_p7 }
  0x31   : > { %p1599_p11 = pneg %p1598_p4 }
  0x33   : > { %p1604_p1 = pnand %p1602_p13, %p1599_p11 }
  0x35   : > { %1607 = shalt.err (!%p1604_p1)
}
  0x36   : > { %s1608_s12 = scalar_lea.vmem %s2038_s17, 2048  ;;  %p1616_p8 = scmp.lt.s32.totalorder %s2038_s17, %s2038_s17 }
  0x37   : > { %p1609_p0 = scmp.ne.s32.totalorder %s2038_s17, %s1608_s12  ;;  %p1617_p6 = scmp.lt.s32.totalorder %s1608_s12, %s1608_s12 }
  0x39   : > { %p1611_p3 = pnand %p1609_p0, %p2066_p9  ;;  %p1618_p7 = por %p1617_p6, %p1616_p8 }
  0x3b   : > { %p1612_p10 = pneg %p1611_p3 }
  0x3d   : > { %p1619_p4 = pnand %p1618_p7, %p1612_p10 }
  0x3f   : > { %1622 = shalt.err (!%p1619_p4)
}
  0x40   : > { %s1895_s26 = smov 128   ;;  %s1896_s8 = smov 8  }
  0x41   : > { %1503 = dma.hbm_to_vmem [thread:$0]  (!%p2046_p5), %s2455_s3, 2048, %s2038_s17, [#allocation6], %s1895_s26, %s1895_s26, %s1896_s8  }
  0x42   : > { %s1623_s12 = scalar_lea.hbm %s2412_s4, 2048 }
  0x43   : > { %p1624_p3 = scmp.ne.s32.totalorder %s2412_s4, %s1623_s12  ;;  %p1630_p10 = scmp.lt.u32.totalorder %s1623_s12, %s2412_s4 }
  0x45   : > { %p1626_p6 = pnand %p1624_p3, %p2066_p9 }
  0x47   : > { %p1627_p8 = pneg %p1626_p6 }
  0x49   : > { %p1632_p0 = pnand %p1630_p10, %p1627_p8 }
  0x4b   : > { %1635 = shalt.err (!%p1632_p0)
}
  0x4c   : > { %s1636_s17 = scalar_lea.vmem %s2056_s28, 2048  ;;  %p1644_p7 = scmp.lt.s32.totalorder %s2056_s28, %s2056_s28 }
  0x4d   : > { %p1637_p11 = scmp.ne.s32.totalorder %s2056_s28, %s1636_s17  ;;  %p1645_p4 = scmp.lt.s32.totalorder %s1636_s17, %s1636_s17 }
  0x4f   : > { %p1639_p13 = pnand %p1637_p11, %p2066_p9  ;;  %p1646_p3 = por %p1645_p4, %p1644_p7 }
  0x51   : > { %p1640_p1 = pneg %p1639_p13 }
  0x53   : > { %p1647_p6 = pnand %p1646_p3, %p1640_p1 }
  0x55   : > { %1650 = shalt.err (!%p1647_p6)
}
  0x56   : > { %1506 = dma.hbm_to_vmem [thread:$0]  (!%p2046_p5), %s2412_s4, 2048, %s2056_s28, [#allocation6], %s1895_s26, %s1895_s26, %s1896_s8  }
  0x57   : > { %s1897_s10 = smov [#allocation8]   ;;  %s1651_s16 = scalar_lea.hbm %s2413_s5, 2048 }
  0x58   : > { %s406_s11 = sshll.u32 %s1897_s10, 4  ;;  %p1652_p8 = scmp.ne.s32.totalorder %s2413_s5, %s1651_s16  ;;  %s407_s11 = int_to_ptr.vmem [resolvable:$true] %s406_s11 }
  0x59   : > { %p1658_p11 = scmp.lt.u32.totalorder %s1651_s16, %s2413_s5 }
  0x5a   : > { %p1654_p10 = pnand %p1652_p8, %p2066_p9 }
  0x5c   : > { %p1655_p0 = pneg %p1654_p10 }
  0x5e   : > { %p1660_p13 = pnand %p1658_p11, %p1655_p0 }
  0x60   : > { %1663 = shalt.err (!%p1660_p13)
}
  0x61   : > { %s1664_s28 = scalar_lea.vmem %s407_s11, 2048  ;;  %p1672_p3 = scmp.lt.s32.totalorder %s407_s11, %s407_s11 }
  0x62   : > { %p1665_p1 = scmp.ne.s32.totalorder %s407_s11, %s1664_s28  ;;  %p1673_p6 = scmp.lt.s32.totalorder %s1664_s28, %s1664_s28 }
  0x64   : > { %p1667_p7 = pnand %p1665_p1, %p2066_p9  ;;  %p1674_p12 = por %p1673_p6, %p1672_p3 }
  0x66   : > { %p1668_p4 = pneg %p1667_p7 }
  0x68   : > { %p1675_p2 = pnand %p1674_p12, %p1668_p4 }
  0x6a   : > { %1678 = shalt.err (!%p1675_p2)
}
  0x6b   : > { %1509 = dma.hbm_to_vmem [thread:$0]  (!%p2046_p5), %s2413_s5, 2048, %s407_s11, [#allocation9], %s1895_s26, %s1895_s26, %s1896_s8  }
  0x6c   : > { %s49_s29 = sadd.s32 1, %s1887_s25  ;;  %s58_s7 = sadd.s32 1, %s1879_s23 }
  0x6d   : > { %p51_p12 = scmp.ge.s32.totalorder %s49_s29, 2  ;;  %s429_s10 = sand.u32 1, %s1879_s23  }
  0x6e   : > { %s1189_s18 = sshll.u32 %s429_s10, 4  ;;  %s1190_s21 = sshll.u32 %s1887_s25, 7 }
  0x6f   : > { %s2486_s29 = smov (%p51_p12, %s49_s29), 0  ;;  %s2148_s12 = scalar_lea.hbm %s2408_s0, %s1190_s21 }
  0x70   : > { %s54_s14 = ssub.s32 %s1887_s25, %s2486_s29  ;;  %s433_s11 = scalar_lea.vmem [#allocation2], %s1189_s18 }
  0x71   : > { %p56_p5 = scmp.eq.s32.totalorder %s54_s14, 0  ;;  %s442_s17 = sshll.u32 %s433_s11, 4  ;;  %s2150_s17 = int_to_ptr.vmem [resolvable:$true] %s442_s17 }
  0x72   : > { %s2155_s3 = scalar_lea.sflag [#allocation3], %s429_s10  ;;  %s1679_s6 = scalar_lea.hbm %s2148_s12, 256 }
  0x73   : > { %s2153_s28 = scalar_select %p56_p5, %s1879_s23, %s58_s7  }
  0x74   : > { %p1680_p2 = scmp.ne.s32.totalorder %s2148_s12, %s1679_s6  ;;  %p2457_p9 = scmp.ne.s32.totalorder %s2454_s19, 0 }
  0x75   : > { %s1684_s14 = scalar_lea.hbm %s2408_s0, 512  ;;  %p1685_p11 = scmp.lt.u32.totalorder %s2148_s12, %s2408_s0 }
  0x76   : > { %p1681_p8 = pneg %p2457_p9  ;;  %p1686_p13 = scmp.lt.u32.totalorder %s1684_s14, %s1679_s6 }
  0x77   : > { %p1688_p7 = scmp.lt.u32.totalorder %s1679_s6, %s2148_s12 }
  0x78   : > { %p1682_p10 = pnand %p1681_p8, %p1680_p2  ;;  %p1687_p1 = por %p1686_p13, %p1685_p11 }
  0x7a   : > { %p1683_p0 = pneg %p1682_p10  ;;  %p1689_p4 = por %p1688_p7, %p1687_p1 }
  0x7c   : > { %p1690_p3 = pnand %p1689_p4, %p1683_p0 }
  0x7e   : > { %1693 = shalt.err (!%p1690_p3)
}
  0x7f   : > { %s1694_s7 = scalar_lea.vmem %s2150_s17, 256  ;;  %s1898_s10 = smov [#allocation2]  }
  0x80   : > { %p1695_p6 = scmp.ne.s32.totalorder %s2150_s17, %s1694_s7  ;;  %s1699_s11 = sshll.u32 %s1898_s10, 4  ;;  %s1700_s11 = int_to_ptr.vmem [resolvable:$false] %s1699_s11 }
  0x81   : > { %s1701_s21 = scalar_lea.vmem %s1700_s11, 512  ;;  %p1702_p2 = scmp.lt.s32.totalorder %s2150_s17, %s1700_s11 }
  0x82   : > { %p1697_p12 = pnand %p1695_p6, %p1681_p8  ;;  %p1703_p10 = scmp.lt.s32.totalorder %s1701_s21, %s1694_s7 }
  0x84   : > { %p1698_p5 = pneg %p1697_p12  ;;  %p1704_p11 = por %p1703_p10, %p1702_p2 }
  0x86   : > { %p1705_p13 = pnand %p1704_p11, %p1698_p5 }
  0x88   : > { %1708 = shalt.err (!%p1705_p13)
}
  0x89   : > { %s1899_s6 = smov 256   ;;  %p2458_p8 = scmp.ne.s32.totalorder %s2452_s15, 0 }
  0x8a   : > { %1513 = dma.hbm_to_vmem [thread:$0]  (!%p2457_p9), %s2148_s12, 256, %s2150_s17, %s2155_s3, %s1899_s6, %s1895_s26, %s1896_s8  }
  0x8b   : > { %454 = sbr.rel (%p2458_p8) target bundleno = 755 (0x2f3), region = 56  ;;  %s2188_s16 = sand.u32 (!%p2458_p8), 1, %s1875_s22  }
  0x8c   : > { %s2191_s14 = sshll.u32 (!%p2458_p8), %s2188_s16, 4  ;;  %s457_s18 = scalar_lea.sflag (!%p2458_p8), [#allocation3], %s2188_s16 }
  0x8d   : > { %s460_s19 = scalar_lea.vmem (!%p2458_p8), [#allocation2], %s2191_s14  ;;  %p2459_p0 = scmp.ne.s32.totalorder (!%p2458_p8), %s2448_s30, 0 }
  0x92   : > { %1846 = dma.done.wait (%p2459_p0), %s457_s18, 256  }
  0x93   : > { %1848 = vsyncadd (%p2459_p0), %s457_s18, 4294967040  ;;  %p2460_p9 = scmp.eq.s32.totalorder %s2002_s27, 0 }
  0x95   : > { %1850 = dma.done.wait (%p2460_p9), [#allocation6], 4096   ;;  %p2461_p1 = pmov %p2460_p9 }
  0x97   : > { %1852 = vsyncadd (%p2461_p1), [#allocation6], 4294963200  ;;  %p2462_p7 = pmov %p2461_p1 }
  0x98   : > { %p2463_p4 = pmov %p2461_p1 }
  0x99   : > { %1854 = dma.done.wait (%p2462_p7), [#allocation9], 2048  }
  0x9a   : > { %1856 = vsyncadd (%p2463_p4), [#allocation9], 4294965248  ;;  %v533_v0 = vld [vmem:[%s460_s19] sm:$0xff]  ;;  %v534_v1 = vld [vmem:[%s460_s19 + $0x8] sm:$0xff]  ;;  %s2224_s12 = scalar_lea.vmem [#allocation10], %s2191_s14  ;;  %s2229_s17 = sshll.u32 %s1883_s24, 8 }
  0x9b   : > { %537 = vadd.xlane.f32.xlu0 %v533_v0  ;;  %v578_v2 = vld [vmem:[#allocation5] sm:$0xff]  ;;  %v579_v3 = vld [vmem:[#allocation5 + $0x8] sm:$0xff]  ;;  %v580_v7 = vld [vmem:[#allocation5 + $0x10] sm:$0xff]  ;;  %s2235_s7 = scalar_lea.hbm %s2417_s9, %s2229_s17  ;;  %s911_s10 = sshll.u32 %s2224_s12, 4  ;;  %s2238_s10 = int_to_ptr.vmem [resolvable:$true] %s911_s10 }
  0x9c   : > { %v680_v4 = vld [vmem:[#allocation7] sm:$0xff]  ;;  %v1382_v5 = vpack.c.bf16 %v579_v3, %v578_v2  ;;  %v681_v6 = vld [vmem:[#allocation7 + $0x8] sm:$0xff]  ;;  %v581_v8 = vld [vmem:[#allocation5 + $0x18] sm:$0xff]  ;;  %s881_s11 = scalar_lea.sflag [#allocation4], %s2188_s16  ;;  %s1709_s21 = scalar_lea.vmem %s2238_s10, 256 }
  0x9d   : > { %v1414_v9 = vpack.c.bf16 %v681_v6, %v680_v4  ;;  %v1386_v10 = vpack.c.bf16 %v581_v8, %v580_v7  ;;  %v682_v11 = vld [vmem:[#allocation7 + $0x10] sm:$0xff]  ;;  %v683_v12 = vld [vmem:[#allocation7 + $0x18] sm:$0xff]  ;;  %v582_v22 = vld [vmem:[#allocation5 + $0x20] sm:$0xff]  ;;  %p1710_p3 = scmp.ne.s32.totalorder %s2238_s10, %s1709_s21  ;;  %p2464_p6 = scmp.ne.s32.totalorder %s2449_s13, 0 }
  0x9e   : > { %1383 = vmatprep.subr.bf16.mxu0 %v1382_v5  ;;  %v1418_v13 = vpack.c.bf16 %v683_v12, %v682_v11  ;;  %v583_v23 = vld [vmem:[#allocation5 + $0x28] sm:$0xff]  ;;  %v684_v25 = vld [vmem:[#allocation7 + $0x20] sm:$0xff]  ;;  %v584_v28 = vld [vmem:[#allocation5 + $0x30] sm:$0xff]  ;;  %s1900_s24 = smov [#allocation10]  }
  0x9f   : > { %539 = vadd.xlane.f32.xlu0 %v534_v1  ;;  %1385 = vmatpush3.bf16.msra.mxu0 %v1382_v5  ;;  %v1390_v24 = vpack.c.bf16 %v583_v23, %v582_v22  ;;  %v685_v26 = vld [vmem:[#allocation7 + $0x28] sm:$0xff]  ;;  %v585_v29 = vld [vmem:[#allocation5 + $0x38] sm:$0xff]  ;;  %v686_v31 = vld [vmem:[#allocation7 + $0x30] sm:$0xff]  ;;  %p1711_p12 = pnand %p1710_p3, %p2464_p6  ;;  %s1713_s6 = sshll.u32 %s1900_s24, 4  ;;  %s1714_s6 = int_to_ptr.vmem [resolvable:$false] %s1713_s6 }
  0xa0   : > { %1415 = vmatprep.subr.bf16.mxu1 %v1414_v9  ;;  %1387 = vmatprep.subr.bf16.mxu0 %v1386_v10  ;;  %v1422_v27 = vpack.c.bf16 %v685_v26, %v684_v25  ;;  %v1394_v30 = vpack.c.bf16 %v585_v29, %v584_v28  ;;  %v687_v32 = vld [vmem:[#allocation7 + $0x38] sm:$0xff]  ;;  %v586_v34 = vld [vmem:[#allocation5 + $0x40] sm:$0xff]  ;;  %v587_v35 = vld [vmem:[#allocation5 + $0x48] sm:$0xff]  ;;  %s1715_s18 = scalar_lea.vmem %s1714_s6, 512  ;;  %p1716_p2 = scmp.lt.s32.totalorder %s2238_s10, %s1714_s6 }
  0xa1   : > { %1417 = vmatpush3.bf16.msra.mxu1 %v1414_v9  ;;  %v1426_v33 = vpack.c.bf16 %v687_v32, %v686_v31  ;;  %v1398_v36 = vpack.c.bf16 %v587_v35, %v586_v34  ;;  %v688_v37 = vld [vmem:[#allocation7 + $0x40] sm:$0xff]  ;;  %v689_v38 = vld [vmem:[#allocation7 + $0x48] sm:$0xff]  ;;  %v588_v40 = vld [vmem:[#allocation5 + $0x50] sm:$0xff]  ;;  %p1712_p5 = pneg %p1711_p12  ;;  %p1717_p10 = scmp.lt.s32.totalorder %s1715_s18, %s1709_s21 }
  0xa2   : > { %1419 = vmatprep.subr.bf16.mxu1 %v1418_v13  ;;  %v1430_v39 = vpack.c.bf16 %v689_v38, %v688_v37  ;;  %v589_v41 = vld [vmem:[#allocation5 + $0x58] sm:$0xff]  ;;  %v690_v42 = vld [vmem:[#allocation7 + $0x50] sm:$0xff]  ;;  %v590_v45 = vld [vmem:[#allocation5 + $0x60] sm:$0xff] }
  0xa3   : > { %1389 = vmatpush3.bf16.msra.mxu0 %v1386_v10  ;;  %v1402_v43 = vpack.c.bf16 %v589_v41, %v588_v40  ;;  %v691_v44 = vld [vmem:[#allocation7 + $0x58] sm:$0xff]  ;;  %v591_v46 = vld [vmem:[#allocation5 + $0x68] sm:$0xff]  ;;  %v692_v49 = vld [vmem:[#allocation7 + $0x60] sm:$0xff]  ;;  %p1718_p11 = por %p1717_p10, %p1716_p2 }
  0xa4   : > { %1391 = vmatprep.subr.bf16.mxu0 %v1390_v24  ;;  %v1434_v47 = vpack.c.bf16 %v691_v44, %v690_v42  ;;  %v1406_v48 = vpack.c.bf16 %v591_v46, %v590_v45  ;;  %v693_v50 = vld [vmem:[#allocation7 + $0x68] sm:$0xff]  ;;  %v592_v52 = vld [vmem:[#allocation5 + $0x70] sm:$0xff]  ;;  %v593_v53 = vld [vmem:[#allocation5 + $0x78] sm:$0xff] }
  0xa5   : > { %1421 = vmatpush3.bf16.msra.mxu1 %v1418_v13  ;;  %v1438_v51 = vpack.c.bf16 %v693_v50, %v692_v49  ;;  %v1410_v54 = vpack.c.bf16 %v593_v53, %v592_v52  ;;  %v694_v55 = vld [vmem:[#allocation7 + $0x70] sm:$0xff]  ;;  %v695_v56 = vld [vmem:[#allocation7 + $0x78] sm:$0xff]  ;;  %v780_v58 = vld [vmem:[#allocation8] sm:$0xff]  ;;  %p1719_p13 = pnand %p1718_p11, %p1712_p5 }
  0xa6   : > { %1423 = vmatprep.subr.bf16.mxu1 %v1422_v27  ;;  %v1442_v57 = vpack.c.bf16 %v695_v56, %v694_v55  ;;  %v781_v59 = vld [vmem:[#allocation8 + $0x8] sm:$0xff]  ;;  %v1200_v4 = vld [vmem:[%s2409_s1] ss:$0 sm:$0xff]  ;;  %v782_v11 = vld [vmem:[#allocation8 + $0x10] sm:$0xff] }
  0xa7   : > { %1393 = vmatpush3.bf16.msra.mxu0 %v1390_v24  ;;  %v1446_v60 = vpack.c.bf16 %v781_v59, %v780_v58  ;;  %v1201_v6 = vld [vmem:[%s2410_s2] ss:$0 sm:$0xff]  ;;  %v783_v12 = vld [vmem:[#allocation8 + $0x18] sm:$0xff]  ;;  %v789_v23 = vld [vmem:[#allocation8 + $0x48] sm:$0xff] }
  0xa8   : > { %1395 = vmatprep.subr.bf16.mxu0 %v1394_v30  ;;  %v788_v22 = vld [vmem:[#allocation8 + $0x40] sm:$0xff]  ;;  %v790_v25 = vld [vmem:[#allocation8 + $0x50] sm:$0xff]  ;;  %v791_v26 = vld [vmem:[#allocation8 + $0x58] sm:$0xff] }
  0xa9   : > { %1425 = vmatpush3.bf16.msra.mxu1 %v1422_v27  ;;  %v1462_v24 = vpack.c.bf16 %v789_v23, %v788_v22  ;;  %v1466_v27 = vpack.c.bf16 %v791_v26, %v790_v25  ;;  %v792_v28 = vld [vmem:[#allocation8 + $0x60] sm:$0xff]  ;;  %v793_v29 = vld [vmem:[#allocation8 + $0x68] sm:$0xff]  ;;  %v794_v31 = vld [vmem:[#allocation8 + $0x70] sm:$0xff] }
  0xaa   : > { %1427 = vmatprep.subr.bf16.mxu1 %v1426_v33  ;;  %v795_v32 = vld [vmem:[#allocation8 + $0x78] sm:$0xff] }
  0xab   : > { %1397 = vmatpush3.bf16.msra.mxu0 %v1394_v30  ;;  %v1470_v30 = vpack.c.bf16 %v793_v29, %v792_v28 }
  0xac   : > { %1399 = vmatprep.subr.bf16.mxu0 %v1398_v36 }
  0xad   : > { %1429 = vmatpush3.bf16.msra.mxu1 %v1426_v33  ;;  %v1474_v33 = vpack.c.bf16 %v795_v32, %v794_v31 }
  0xae   : > { %1431 = vmatprep.subr.bf16.mxu1 %v1430_v39 }
  0xaf   : > { %1401 = vmatpush3.bf16.msra.mxu0 %v1398_v36 }
  0xb0   : > { %1403 = vmatprep.subr.bf16.mxu0 %v1402_v43 }
  0xb1   : > { %1433 = vmatpush3.bf16.msra.mxu1 %v1430_v39 }
  0xb2   : > { %1435 = vmatprep.subr.bf16.mxu1 %v1434_v47 }
  0xb3   : > { %1405 = vmatpush3.bf16.msra.mxu0 %v1402_v43 }
  0xb4   : > { %1407 = vmatprep.subr.bf16.mxu0 %v1406_v48 }
  0xb5   : > { %1437 = vmatpush3.bf16.msra.mxu1 %v1434_v47 }
  0xb6   : > { %1439 = vmatprep.subr.bf16.mxu1 %v1438_v51 }
  0xb7   : > { %1409 = vmatpush3.bf16.msra.mxu0 %v1406_v48 }
  0xb8   : > { %1411 = vmatprep.subr.bf16.mxu0 %v1410_v54 }
  0xb9   : > { %1441 = vmatpush3.bf16.msra.mxu1 %v1438_v51 }
  0xba   : > { %1443 = vmatprep.subr.bf16.mxu1 %v1442_v57 }
  0xbb   : > { %1413 = vmatpush3.bf16.msra.mxu0 %v1410_v54 }
  0xbc   : > { %1447 = vmatprep.subr.bf16.mxu0 %v1446_v60 }
  0xbd   : > { %1445 = vmatpush3.bf16.msra.mxu1 %v1442_v57 }
 0x128   : > { %v538_v14 = vpop.xlane.xlu0 %537 }
 0x129   : > { %v542_v15 = vmul.f32 0.0078125, %v538_v14 }
 0x12b   : > { %v2207_v16 = vsub.f32 %v533_v0, %v542_v15  ;;  %v1450_v15 = vpack.c.bf16 %v783_v12, %v782_v11 }
 0x12c   : > { %v540_v17 = vpop.xlane.xlu0 %539 }
 0x12d   : > { %v543_v18 = vmul.f32 0.0078125, %v540_v17  ;;  %v546_v19 = vmul.f32 %v2207_v16, %v2207_v16  ;;  %v785_v17 = vld [vmem:[#allocation8 + $0x28] sm:$0xff] }
 0x12f   : > { %v2211_v20 = vsub.f32 %v534_v1, %v543_v18  ;;  %548 = vadd.xlane.f32.xlu1 %v546_v19  ;;  %v786_v19 = vld [vmem:[#allocation8 + $0x30] sm:$0xff] }
 0x131   : > { %v547_v21 = vmul.f32 %v2211_v20, %v2211_v20 }
 0x133   : > { %550 = vadd.xlane.f32.xlu1 %v547_v21 }
 0x1bc   : > { %v549_v61 = vpop.xlane.xlu1 %548 }
 0x1bd   : > { %v552_v62 = vmul.f32 0.0078125, %v549_v61 }
 0x1bf   : > { %v554_v63 = vadd.f32 1e-05, %v552_v62 }
 0x1c0   : > { %v551_v0 = vpop.xlane.xlu1 %550 }
 0x1c1   : > { %1591 = vrsqrt.f32 %v554_v63  ;;  %v553_v1 = vmul.f32 0.0078125, %v551_v0 }
 0x1c3   : > { %v555_v2 = vadd.f32 1e-05, %v553_v1 }
 0x1c5   : > { %1593 = vrsqrt.f32 %v555_v2 }
 0x1cb   : > { %v1592_v3 = vpop.eup %1591 }
 0x1cc   : > { %v558_v5 = vmul.f32 %v1592_v3, %v2207_v16  ;;  %v784_v16 = vld [vmem:[#allocation8 + $0x20] sm:$0xff] }
 0x1cd   : > { %v1454_v18 = vpack.c.bf16 %v785_v17, %v784_v16 }
 0x1ce   : > { %v566_v7 = vmul.f32 %v1200_v4, %v558_v5 }
 0x1cf   : > { %v1594_v8 = vpop.eup %1593 }
 0x1d0   : > { %v574_v9 = vadd.f32 %v1201_v6, %v566_v7  ;;  %v559_v10 = vmul.f32 %v1594_v8, %v2211_v20  ;;  %v787_v20 = vld [vmem:[#allocation8 + $0x38] sm:$0xff] }
 0x1d1   : > { %v1458_v21 = vpack.c.bf16 %v787_v20, %v786_v19 }
 0x1d2   : > { %1309 = vmatprep.mubr.f32.mxu0 %v574_v9  ;;  %1344 = vmatprep.mubr.f32.mxu1 %v574_v9  ;;  %v567_v13 = vmul.f32 %v1200_v4, %v559_v10  ;;  %576 = vst [vmem:[%s2224_s12] sm:$0xff] %v574_v9 }
 0x1d4   : > { %v575_v14 = vadd.f32 %v1201_v6, %v567_v13 }
 0x1d6   : > { %1310 = vmatmul.mubr.f32.vlgmr.msra.gmra.mrb[0].mxu0 %v575_v14  ;;  %1345 = vmatmul.mubr.f32.vlgmr.msra.gmra.mrb[0].mxu1 %v575_v14  ;;  %577 = vst [vmem:[%s2224_s12 + $0x8] sm:$0xff] %v575_v14 }
 0x1d7   : > { %1449 = vmatpush3.bf16.msra.mxu0 %v1446_v60  ;;  %1379 = vmatprep.mubr.f32.mxu0 %v574_v9 }
 0x1d8   : > { %1451 = vmatprep.subr.bf16.mxu0 %v1450_v15 }
 0x1db   : > { %1453 = vmatpush3.bf16.msra.mxu0 %v1450_v15 }
 0x1dc   : > { %1455 = vmatprep.subr.bf16.mxu0 %v1454_v18 }
 0x1df   : > { %1457 = vmatpush3.bf16.msra.mxu0 %v1454_v18 }
 0x1e0   : > { %1459 = vmatprep.subr.bf16.mxu0 %v1458_v21 }
 0x1e3   : > { %1461 = vmatpush3.bf16.msra.mxu0 %v1458_v21 }
 0x1e4   : > { %1463 = vmatprep.subr.bf16.mxu0 %v1462_v24 }
 0x1e7   : > { %1465 = vmatpush3.bf16.msra.mxu0 %v1462_v24 }
 0x1e8   : > { %1467 = vmatprep.subr.bf16.mxu0 %v1466_v27 }
 0x1eb   : > { %1469 = vmatpush3.bf16.msra.mxu0 %v1466_v27 }
 0x1ec   : > { %1471 = vmatprep.subr.bf16.mxu0 %v1470_v30 }
 0x1ef   : > { %1473 = vmatpush3.bf16.msra.mxu0 %v1470_v30 }
 0x1f0   : > { %1475 = vmatprep.subr.bf16.mxu0 %v1474_v33 }
 0x1f3   : > { %1477 = vmatpush3.bf16.msra.mxu0 %v1474_v33 }
 0x1f6   : > { %1380 = vmatmul.mubr.f32.vlgmr.msra.gmra.mrb[2].mxu0 %v575_v14 }
 0x1f7   : > { %1722 = shalt.err (!%p1719_p13)
}
 0x1f8   : > { %s1723_s19 = scalar_lea.hbm %s2235_s7, 256  ;;  %s1727_s26 = scalar_lea.hbm %s2417_s9, 512 }
 0x1f9   : > { %p1724_p8 = scmp.ne.s32.totalorder %s2235_s7, %s1723_s19  ;;  %p1728_p1 = scmp.lt.u32.totalorder %s2235_s7, %s2417_s9 }
 0x1fa   : > { %p1729_p7 = scmp.lt.u32.totalorder %s1727_s26, %s1723_s19  ;;  %p1731_p3 = scmp.lt.u32.totalorder %s1723_s19, %s2235_s7 }
 0x1fb   : > { %p1725_p0 = pnand %p1724_p8, %p2464_p6 }
 0x1fc   : > { %p1730_p4 = por %p1729_p7, %p1728_p1 }
 0x1fd   : > { %p1726_p9 = pneg %p1725_p0 }
 0x1fe   : > { %p1732_p12 = por %p1731_p3, %p1730_p4 }
 0x200   : > { %p1733_p5 = pnand %p1732_p12, %p1726_p9 }
 0x202   : > { %1736 = shalt.err (!%p1733_p5)
}
 0x203   : > { %s2434_s3 = smov 128   ;;  %s2436_s20 = smov 8  }
 0x204   : > { %1492 = dma.vmem_to_hbm [thread:$0]  (%p2464_p6), %s2238_s10, 256, %s2235_s7, %s881_s11, %s2434_s3, %s2434_s3, %s2436_s20  }
 0x205   : > { %s2465_s6 = sld [smem:[#allocation26_spill]]  ;;  %s2466_s30 = sld [smem:[#allocation27_spill]] }
 0x206   : > { %s513_s15 = scalar_lea.vmem [#allocation11], %s2191_s14  ;;  %s885_s8 = sand.u32 1, %s2002_s27  }
 0x207   : > { %s929_s26 = sshll.u32 %s513_s15, 4  ;;  %s520_s7 = scalar_lea.vmem [#allocation13], %s2191_s14  ;;  %s2276_s26 = int_to_ptr.vmem [resolvable:$true] %s929_s26 }
 0x208   : > { %s947_s10 = sshll.u32 %s520_s7, 4  ;;  %s2467_s21 = sld [smem:[#allocation29_spill]]  ;;  %s2284_s10 = int_to_ptr.vmem [resolvable:$true] %s947_s10 }
 0x209   : > { %s2469_s19 = sld [smem:[#allocation30_spill]]  ;;  %s2292_s3 = scalar_lea.sflag [#allocation12], %s885_s8 }
 0x20a   : > { %s1737_s20 = scalar_lea.vmem %s2276_s26, 256 }
 0x20b   : > { %v1202_v34 = vld [vmem:[%s2465_s6] ss:$0 sm:$0xff]  ;;  %p1738_p2 = scmp.ne.s32.totalorder %s2276_s26, %s1737_s20 }
 0x20c   : > { %v1203_v35 = vld [vmem:[%s2466_s30] ss:$0 sm:$0xff] }
 0x20d   : > { %p1739_p10 = pnand %p1738_p2, %p2464_p6 }
 0x20e   : > { %s2468_s6 = smov %s2467_s21  ;;  %s2282_s24 = scalar_lea.hbm %s2467_s21, %s2229_s17 }
 0x20f   : > { %s2290_s30 = scalar_lea.hbm %s2469_s19, %s2229_s17  ;;  %p1740_p11 = pneg %p1739_p10 }
 0x2a9   : > { %v1311_v36 = vpop.f32.mrb[0].mxu0  ;;  %v1346_v37 = vpop.f32.mrb[0].mxu1 }
 0x2aa   : > { %v673_v38 = vadd.f32 %v1311_v36, %v1202_v34  ;;  %v775_v39 = vadd.f32 %v1346_v37, %v1203_v35  ;;  %v667_v40 = vpop.f32.mrb[1].mxu0  ;;  %v769_v41 = vpop.f32.mrb[1].mxu1 }
 0x2ab   : > { %v668_v42 = vadd.f32 %v1202_v34, %v667_v40  ;;  %v770_v43 = vadd.f32 %v1203_v35, %v769_v41 }
 0x2ac   : > { %v677_v44 = vmul.f32 0.17677669, %v673_v38  ;;  %779 = vst [vmem:[%s520_s7 + $0x8] sm:$0xff] %v775_v39 }
 0x2ad   : > { %v676_v45 = vmul.f32 0.17677669, %v668_v42  ;;  %778 = vst [vmem:[%s520_s7] sm:$0xff] %v770_v43  ;;  %s1903_s7 = smov [#allocation11]  }
 0x2ae   : > { %679 = vst [vmem:[%s513_s15 + $0x8] sm:$0xff] %v677_v44  ;;  %s1741_s11 = sshll.u32 %s1903_s7, 4  ;;  %s1742_s11 = int_to_ptr.vmem [resolvable:$false] %s1741_s11 }
 0x2af   : > { %678 = vst [vmem:[%s513_s15] sm:$0xff] %v676_v45  ;;  %s1743_s12 = scalar_lea.vmem %s1742_s11, 512  ;;  %p1744_p13 = scmp.lt.s32.totalorder %s2276_s26, %s1742_s11 }
 0x2b0   : > { %p1745_p8 = scmp.lt.s32.totalorder %s1743_s12, %s1737_s20 }
 0x2b2   : > { %p1746_p0 = por %p1745_p8, %p1744_p13 }
 0x2b4   : > { %p1747_p9 = pnand %p1746_p0, %p1740_p11 }
 0x2b6   : > { %1750 = shalt.err (!%p1747_p9)
}
 0x2b7   : > { %s1751_s15 = scalar_lea.hbm %s2282_s24, 256  ;;  %s1755_s27 = scalar_lea.hbm %s2468_s6, 512 }
 0x2b8   : > { %p1752_p1 = scmp.ne.s32.totalorder %s2282_s24, %s1751_s15  ;;  %p1756_p3 = scmp.lt.u32.totalorder %s2282_s24, %s2468_s6 }
 0x2b9   : > { %p1757_p12 = scmp.lt.u32.totalorder %s1755_s27, %s1751_s15  ;;  %p1759_p2 = scmp.lt.u32.totalorder %s1751_s15, %s2282_s24 }
 0x2ba   : > { %p1753_p7 = pnand %p1752_p1, %p2464_p6 }
 0x2bb   : > { %p1758_p5 = por %p1757_p12, %p1756_p3 }
 0x2bc   : > { %p1754_p4 = pneg %p1753_p7 }
 0x2bd   : > { %p1760_p10 = por %p1759_p2, %p1758_p5 }
 0x2bf   : > { %p1761_p11 = pnand %p1760_p10, %p1754_p4 }
 0x2c1   : > { %1764 = shalt.err (!%p1761_p11)
}
 0x2c2   : > { %s2470_s20 = smov 8   ;;  %s2471_s11 = smov 128  }
 0x2c3   : > { %1493 = dma.vmem_to_hbm [thread:$0]  (%p2464_p6), %s2276_s26, 256, %s2282_s24, %s2292_s3, %s2471_s11, %s2471_s11, %s2470_s20  }
 0x2c4   : > { %s1765_s12 = scalar_lea.vmem %s2284_s10, 256  ;;  %s1904_s15 = smov [#allocation13]  }
 0x2c5   : > { %p1766_p13 = scmp.ne.s32.totalorder %s2284_s10, %s1765_s12  ;;  %s1769_s8 = sshll.u32 %s1904_s15, 4  ;;  %s1770_s8 = int_to_ptr.vmem [resolvable:$false] %s1769_s8 }
 0x2c6   : > { %s1771_s21 = scalar_lea.vmem %s1770_s8, 512  ;;  %p1772_p9 = scmp.lt.s32.totalorder %s2284_s10, %s1770_s8 }
 0x2c7   : > { %p1767_p8 = pnand %p1766_p13, %p2464_p6  ;;  %p1773_p1 = scmp.lt.s32.totalorder %s1771_s21, %s1765_s12 }
 0x2c9   : > { %p1768_p0 = pneg %p1767_p8  ;;  %p1774_p7 = por %p1773_p1, %p1772_p9 }
 0x2cb   : > { %p1775_p4 = pnand %p1774_p7, %p1768_p0 }
 0x2cd   : > { %1778 = shalt.err (!%p1775_p4)
}
 0x2ce   : > { %s1779_s26 = scalar_lea.hbm %s2290_s30, 256  ;;  %s1783_s18 = scalar_lea.hbm %s2469_s19, 512 }
 0x2cf   : > { %p1780_p3 = scmp.ne.s32.totalorder %s2290_s30, %s1779_s26  ;;  %p1784_p2 = scmp.lt.u32.totalorder %s2290_s30, %s2469_s19 }
 0x2d0   : > { %p1785_p10 = scmp.lt.u32.totalorder %s1783_s18, %s1779_s26  ;;  %p1787_p13 = scmp.lt.u32.totalorder %s1779_s26, %s2290_s30 }
 0x2d1   : > { %p1781_p12 = pnand %p1780_p3, %p2464_p6 }
 0x2d2   : > { %p1786_p11 = por %p1785_p10, %p1784_p2 }
 0x2d3   : > { %p1782_p5 = pneg %p1781_p12 }
 0x2d4   : > { %p1788_p8 = por %p1787_p13, %p1786_p11 }
 0x2d6   : > { %p1789_p0 = pnand %p1788_p8, %p1782_p5 }
 0x2d8   : > { %1792 = shalt.err (!%p1789_p0)
}
 0x2d9   : > { %1494 = dma.vmem_to_hbm [thread:$0]  (%p2464_p6), %s2284_s10, 256, %s2290_s30, %s2292_s3, %s2471_s11, %s2471_s11, %s2470_s20   ;;  %v1381_v47 = vpop.f32.mrb[2].mxu0 }
 0x2da   : > { %s2472_s21 = sld [smem:[#allocation28_spill]]  ;;  %s527_s26 = scalar_lea.vmem [#allocation14], %s2191_s14  ;;  %v869_v49 = vpop.f32.mrb[3].mxu0 }
 0x2db   : > { %s965_s24 = sshll.u32 %s527_s26, 4  ;;  %s2473_s7 = sld [smem:[#allocation31_spill]]  ;;  %s2348_s24 = int_to_ptr.vmem [resolvable:$true] %s965_s24 }
 0x2dc   : > { %s896_s3 = scalar_lea.sflag [#allocation15], %s2188_s16  ;;  %s1793_s10 = scalar_lea.vmem %s2348_s24, 256 }
 0x2dd   : > { %p1794_p9 = scmp.ne.s32.totalorder %s2348_s24, %s1793_s10  ;;  %s1905_s14 = smov [#allocation14]  }
 0x2de   : > { %s1797_s30 = sshll.u32 %s1905_s14, 4  ;;  %s1798_s30 = int_to_ptr.vmem [resolvable:$false] %s1797_s30 }
 0x2df   : > { %p1795_p1 = pnand %p1794_p9, %p2464_p6  ;;  %s1799_s12 = scalar_lea.vmem %s1798_s30, 512 }
 0x2e0   : > { %v1204_v46 = vld [vmem:[%s2472_s21] ss:$0 sm:$0xff]  ;;  %p1800_p4 = scmp.lt.s32.totalorder %s2348_s24, %s1798_s30  ;;  %p1801_p3 = scmp.lt.s32.totalorder %s1799_s12, %s1793_s10 }
 0x2e1   : > { %v875_v48 = vadd.f32 %v1381_v47, %v1204_v46  ;;  %v870_v50 = vadd.f32 %v1204_v46, %v869_v49  ;;  %s2354_s15 = scalar_lea.hbm %s2473_s7, %s2229_s17  ;;  %p1796_p7 = pneg %p1795_p1 }
 0x2e2   : > { %p1802_p12 = por %p1801_p3, %p1800_p4 }
 0x2e3   : > { %879 = vst [vmem:[%s527_s26 + $0x8] sm:$0xff] %v875_v48  ;;  %878 = vst [vmem:[%s527_s26] sm:$0xff] %v870_v50 }
 0x2e4   : > { %p1803_p5 = pnand %p1802_p12, %p1796_p7 }
 0x2e6   : > { %1806 = shalt.err (!%p1803_p5)
}
 0x2e7   : > { %s1807_s17 = scalar_lea.hbm %s2354_s15, 256  ;;  %s1811_s26 = scalar_lea.hbm %s2473_s7, 512 }
 0x2e8   : > { %p1808_p2 = scmp.ne.s32.totalorder %s2354_s15, %s1807_s17  ;;  %p1812_p13 = scmp.lt.u32.totalorder %s2354_s15, %s2473_s7 }
 0x2e9   : > { %p1813_p8 = scmp.lt.u32.totalorder %s1811_s26, %s1807_s17  ;;  %p1815_p9 = scmp.lt.u32.totalorder %s1807_s17, %s2354_s15 }
 0x2ea   : > { %p1809_p10 = pnand %p1808_p2, %p2464_p6 }
 0x2eb   : > { %p1814_p0 = por %p1813_p8, %p1812_p13 }
 0x2ec   : > { %p1810_p11 = pneg %p1809_p10 }
 0x2ed   : > { %p1816_p1 = por %p1815_p9, %p1814_p0 }
 0x2ef   : > { %p1817_p7 = pnand %p1816_p1, %p1810_p11 }
 0x2f1   : > { %1820 = shalt.err (!%p1817_p7)
}
 0x2f2   : > { %1495 = dma.vmem_to_hbm [thread:$0]  (%p2464_p6), %s2348_s24, 256, %s2354_s15, %s896_s3, %s2471_s11, %s2471_s11, %s2470_s20  }
 0x2f3 PF: > { %s2474_s10 = sld [smem:[#allocation22_spill]]  ;;  %s2475_s14 = sld [smem:[#allocation24_spill]] }
 0x2f4   : > { %s2476_s30 = sld [smem:[#allocation23_spill]] }
 0x2f9   : > { %s980_s12 = sand.u32 1, %s2474_s10   ;;  %p2477_p4 = scmp.ne.s32.totalorder %s2475_s14, 0 }
 0x2fa   : > { %p2478_p3 = scmp.ge.s32.totalorder %s2476_s30, 2  ;;  %s981_s17 = scalar_lea.sflag [#allocation4], %s980_s12 }
 0x2fc   : > { %p1515_p12 = pnand %p2478_p3, %p2477_p4 }
 0x2fe   : > { %1858 = dma.done.wait (!%p1515_p12), %s981_s17, 256  }
 0x2ff   : > { %1860 = vsyncadd (!%p1515_p12), %s981_s17, 4294967040  ;;  %s2479_s13 = sadd.s32 4294967294, %s2476_s30  }
 0x300   : > { %s989_s8 = sand.u32 1, %s2479_s13  }
 0x301   : > { %s990_s21 = scalar_lea.sflag [#allocation12], %s989_s8 }
 0x302   : > { %1862 = dma.done.wait (!%p1515_p12), %s990_s21, 512  }
 0x303   : > { %1864 = vsyncadd (!%p1515_p12), %s990_s21, 4294966784  ;;  %s1008_s16 = scalar_lea.sflag [#allocation15], %s980_s12 }
 0x304   : > { %1866 = dma.done.wait (!%p1515_p12), %s1008_s16, 256  }
 0x305   : > { %1868 = vsyncadd (!%p1515_p12), %s1008_s16, 4294967040  ;;  %s37_s26 = sadd.s32 1, %s2476_s30   ;;  %s2480_s21 = smov %s1875_s22 }
 0x306   : > { %p34_p6 = scmp.ge.s32.totalorder %s37_s26, 4   ;;  %s2481_s22 = smov %s1879_s23 }
 0x307   : > { %s2482_s23 = smov %s2153_s28  ;;  %s2483_s24 = smov %s1887_s25 }
 0x308   : > { %s2484_s25 = smov %s2486_s29  ;;  %36 = sbr.rel (!%p34_p6) target bundleno = 20 (0x14), region = 162 }
 0x30f   :  { %1013 = vsyncpa [#allocation3], 1 }
 0x310   :  { %1015 = vsyncpa [#allocation3 + $0x1], 1 }
 0x311   :  { %1016 = vsyncpa [#allocation6], 1 }
 0x312   :  { %1017 = vsyncpa [#allocation9], 1 }
 0x313   :  { %1018 = vsyncpa [#allocation4], 1 }
 0x314   :  { %1020 = vsyncpa [#allocation4 + $0x1], 1 }
 0x315   :  { %1021 = vsyncpa [#allocation12], 1 }
 0x316   :  { %1023 = vsyncpa [#allocation12 + $0x1], 1 }
 0x317   :  { %1024 = vsyncpa [#allocation15], 1 }
 0x318   :  { %1026 = vsyncpa [#allocation15 + $0x1], 1 }

</bundles_post_ra>
